<compile_context>
chip_gen: v5e
topology: v5e:2x2
jax: 0.10.0
libtpu: 0.0.40
codegen_flags: <defaults>
</compile_context>

<pallas_src>
import jax
import jax.numpy as jnp
from jax.experimental import pallas as pl
from jax.experimental.pallas import tpu as pltpu


# --------------------------- model configuration --------------------------- #
INPUT_DIM = 32
HIDDEN_UNITS = [64, 32]
OUTPUT_DIM = 1                      # binary-classification head
# hidden_activation = "relu", final_activation = "sigmoid"


# ------------------------------ Pallas kernel ------------------------------ #
def deep_mlp_kernel(x_ref, w1_ref, b1_ref, w2_ref, b2_ref, w3_ref, b3_ref, o_ref):
    # x_ref:(TB, D)  w1_ref:(D, h1)  b1_ref:(1, h1)  w2_ref:(h1, h2)  b2_ref:(1, h2)
    # w3_ref:(1, h2) (row of the (1, h2) output weight)  b3_ref:(1,) in SMEM
    x = x_ref[...]

    h = jnp.dot(x, w1_ref[...], preferred_element_type=jnp.float32) + b1_ref[...]
    h = jnp.maximum(h, 0.0)                                    # ReLU

    h = jnp.dot(h, w2_ref[...], preferred_element_type=jnp.float32) + b2_ref[...]
    h = jnp.maximum(h, 0.0)                                    # ReLU

    # Final Linear(h2 -> 1): N=1 on the MXU is pure padding + MRF drain latency,
    # so do it on the VPU/XLU: broadcast-multiply + last-axis reduce.
    logit = jnp.sum(h * w3_ref[...], axis=-1, keepdims=True) + b3_ref[0]

    o_ref[...] = jax.nn.sigmoid(logit).astype(o_ref.dtype)     # final activation


def deep_forward(params, x, *, tile_b=64):
    B, D = x.shape
    assert D == INPUT_DIM
    assert B % tile_b == 0, "demo keeps B a multiple of the batch tile"
    h1, h2 = HIDDEN_UNITS

    flops = 2 * B * (D * h1 + h1 * h2 + h2 * OUTPUT_DIM)
    bytes_accessed = 4 * (B * D + D * h1 + h1 * h2 + B * OUTPUT_DIM
                          + h1 + h2 + h2 + 1)

    return pl.pallas_call(
        deep_mlp_kernel,
        out_shape=jax.ShapeDtypeStruct((B, OUTPUT_DIM), jnp.float32),
        grid=(B // tile_b,),
        in_specs=[
            pl.BlockSpec((tile_b, D), lambda i: (i, 0)),           # x  (batch-tiled)
            pl.BlockSpec((D, h1), lambda i: (0, 0)),               # W1 (in, out)
            pl.BlockSpec((1, h1), lambda i: (0, 0)),               # b1
            pl.BlockSpec((h1, h2), lambda i: (0, 0)),              # W2 (in, out)
            pl.BlockSpec((1, h2), lambda i: (0, 0)),               # b2
            pl.BlockSpec((1, h2), lambda i: (0, 0)),               # W3 row
            pl.BlockSpec(memory_space=pltpu.MemorySpace.SMEM),     # b3 scalar (SMEM)
        ],
        out_specs=pl.BlockSpec((tile_b, OUTPUT_DIM), lambda i: (i, 0)),
        compiler_params=pltpu.CompilerParams(
            dimension_semantics=("parallel",)),
        cost_estimate=pl.CostEstimate(
            flops=flops, transcendentals=B, bytes_accessed=bytes_accessed),
    )(x,
      params["w1_t"], params["b1_row"],
      params["w2_t"], params["b2_row"],
      params["w3_row"], params["b3_smem"])


# ----------------------------- parameter init ------------------------------ #
def init_params(key):
    dims = [INPUT_DIM] + HIDDEN_UNITS + [OUTPUT_DIM]
    params = {}
    keys = jax.random.split(key, 2 * (len(dims) - 1))
    for li in range(len(dims) - 1):
        fan_in, fan_out = dims[li], dims[li + 1]
        lim = 1.0 / (fan_in ** 0.5)
        w = jax.random.uniform(keys[2 * li], (fan_out, fan_in),
                               minval=-lim, maxval=lim, dtype=jnp.float32)
        b = jax.random.uniform(keys[2 * li + 1], (fan_out,),
                               minval=-lim, maxval=lim, dtype=jnp.float32)
        params[f"w{li + 1}"] = w            # torch nn.Linear layout (out, in)
        params[f"b{li + 1}"] = b

    # Kernel-facing layout, computed ONCE (no per-call transpose in the jitted path):
    params["w1_t"] = params["w1"].T                       # (D,  h1) -> lane-dense out
    params["b1_row"] = params["b1"].reshape(1, -1)        # (1,  h1)
    params["w2_t"] = params["w2"].T                       # (h1, h2)
    params["b2_row"] = params["b2"].reshape(1, -1)        # (1,  h2)
    params["w3_row"] = params["w3"].reshape(1, -1)        # (1,  h2)  (output_dim == 1)
    params["b3_smem"] = params["b3"].reshape(1,)          # (1,)      scalar -> SMEM
    return params


# --------------------------------- main ------------------------------------ #
if __name__ == "__main__":
    key = jax.random.PRNGKey(0)
    k_param, k_x = jax.random.split(key)

    params = init_params(k_param)

    B = 128
    x = jax.random.normal(k_x, (B, INPUT_DIM), dtype=jnp.float32)

    out = deep_forward(params, x, tile_b=64)
    out = jax.block_until_ready(out)

    # Pure-JAX reference (torch-layout weights): Linear->ReLU->Linear->ReLU->Linear->Sigmoid
    h = jnp.maximum(x @ params["w1"].T + params["b1"], 0.0)
    h = jnp.maximum(h @ params["w2"].T + params["b2"], 0.0)
    ref = jax.nn.sigmoid(h @ params["w3"].T + params["b3"])

    assert out.shape == (B, OUTPUT_DIM)
    assert jnp.allclose(out, ref, atol=1e-5), "mismatch vs reference"

    print("KERNEL_OK")
</pallas_src>

<mosaic_0001>
module attributes {stable_mosaic.version = 11 : i64} {
  func.func @deep_mlp_kernel(%arg0: i32, %arg1: memref<64x32xf32, #tpu.memory_space<vmem>>, %arg2: memref<32x64xf32, #tpu.memory_space<vmem>>, %arg3: memref<1x64xf32, #tpu.memory_space<vmem>>, %arg4: memref<64x32xf32, #tpu.memory_space<vmem>>, %arg5: memref<1x32xf32, #tpu.memory_space<vmem>>, %arg6: memref<1x32xf32, #tpu.memory_space<vmem>>, %arg7: memref<1xf32, #tpu.memory_space<smem>>, %arg8: memref<64x1xf32, #tpu.memory_space<vmem>>) attributes {dimension_semantics = [#tpu.dimension_semantics<parallel>], iteration_bounds = array<i64: 2>, scalar_prefetch = 0 : i64, scratch_operands = 0 : i64, tpu.core_type = #tpu.core_type<tc>, window_params = [{transform_indices = @transform_0, window_bounds = array<i64: 64, 32>}, {pipeline_mode = #tpu.pipeline_mode<synchronous>, transform_indices = @transform_1, window_bounds = array<i64: 32, 64>}, {pipeline_mode = #tpu.pipeline_mode<synchronous>, transform_indices = @transform_2, window_bounds = array<i64: 1, 64>}, {pipeline_mode = #tpu.pipeline_mode<synchronous>, transform_indices = @transform_3, window_bounds = array<i64: 64, 32>}, {pipeline_mode = #tpu.pipeline_mode<synchronous>, transform_indices = @transform_4, window_bounds = array<i64: 1, 32>}, {pipeline_mode = #tpu.pipeline_mode<synchronous>, transform_indices = @transform_5, window_bounds = array<i64: 1, 32>}, {transform_indices = @transform_6, window_bounds = array<i64: 1>}, {transform_indices = @transform_7, window_bounds = array<i64: 64, 1>}]} {
    %c0 = arith.constant 0 : index
    %c0_0 = arith.constant 0 : index
    %0 = vector.load %arg1[%c0, %c0_0] : memref<64x32xf32, #tpu.memory_space<vmem>>, vector<64x32xf32>
    %c0_1 = arith.constant 0 : index
    %c0_2 = arith.constant 0 : index
    %1 = vector.load %arg2[%c0_1, %c0_2] : memref<32x64xf32, #tpu.memory_space<vmem>>, vector<32x64xf32>
    %cst = arith.constant dense<0.000000e+00> : vector<64x64xf32>
    %2 = tpu.matmul %0, %1, %cst {dimension_numbers = #tpu.dot_dimension_numbers<[1], [0], [0], [1], [0, 0, 1, 1], [], []>} : vector<64x32xf32>, vector<32x64xf32>, vector<64x64xf32> -> vector<64x64xf32>
    %c0_3 = arith.constant 0 : index
    %c0_4 = arith.constant 0 : index
    %3 = vector.load %arg3[%c0_3, %c0_4] : memref<1x64xf32, #tpu.memory_space<vmem>>, vector<1x64xf32>
    %4 = vector.broadcast %3 : vector<1x64xf32> to vector<64x64xf32>
    %5 = arith.addf %2, %4 : vector<64x64xf32>
    %cst_5 = arith.constant 0.000000e+00 : f32
    %6 = vector.broadcast %cst_5 : f32 to vector<64x64xf32>
    %7 = arith.maximumf %5, %6 : vector<64x64xf32>
    %c0_6 = arith.constant 0 : index
    %c0_7 = arith.constant 0 : index
    %8 = vector.load %arg4[%c0_6, %c0_7] : memref<64x32xf32, #tpu.memory_space<vmem>>, vector<64x32xf32>
    %cst_8 = arith.constant dense<0.000000e+00> : vector<64x32xf32>
    %9 = tpu.matmul %7, %8, %cst_8 {dimension_numbers = #tpu.dot_dimension_numbers<[1], [0], [0], [1], [0, 0, 1, 1], [], []>} : vector<64x64xf32>, vector<64x32xf32>, vector<64x32xf32> -> vector<64x32xf32>
    %c0_9 = arith.constant 0 : index
    %c0_10 = arith.constant 0 : index
    %10 = vector.load %arg5[%c0_9, %c0_10] : memref<1x32xf32, #tpu.memory_space<vmem>>, vector<1x32xf32>
    %11 = vector.broadcast %10 : vector<1x32xf32> to vector<64x32xf32>
    %12 = arith.addf %9, %11 : vector<64x32xf32>
    %cst_11 = arith.constant 0.000000e+00 : f32
    %13 = vector.broadcast %cst_11 : f32 to vector<64x32xf32>
    %14 = arith.maximumf %12, %13 : vector<64x32xf32>
    %c0_12 = arith.constant 0 : index
    %c0_13 = arith.constant 0 : index
    %15 = vector.load %arg6[%c0_12, %c0_13] : memref<1x32xf32, #tpu.memory_space<vmem>>, vector<1x32xf32>
    %16 = vector.broadcast %15 : vector<1x32xf32> to vector<64x32xf32>
    %17 = arith.mulf %14, %16 : vector<64x32xf32>
    %cst_14 = arith.constant dense<0.000000e+00> : vector<64xf32>
    %18 = vector.multi_reduction <add>, %17, %cst_14 [1] : vector<64x32xf32> to vector<64xf32>
    %19 = vector.shape_cast %18 : vector<64xf32> to vector<64x1xf32>
    %c0_15 = arith.constant 0 : index
    %20 = memref.load %arg7[%c0_15] : memref<1xf32, #tpu.memory_space<smem>>
    %21 = vector.broadcast %20 : f32 to vector<64x1xf32>
    %22 = arith.addf %19, %21 : vector<64x1xf32>
    %23 = arith.negf %22 : vector<64x1xf32>
    %24 = math.exp %23 : vector<64x1xf32>
    %cst_16 = arith.constant 1.000000e+00 : f32
    %25 = vector.broadcast %cst_16 : f32 to vector<64x1xf32>
    %26 = arith.addf %25, %24 : vector<64x1xf32>
    %27 = arith.divf %25, %26 : vector<64x1xf32>
    %c0_17 = arith.constant 0 : index
    %c0_18 = arith.constant 0 : index
    %28 = vector.load %arg8[%c0_17, %c0_18] : memref<64x1xf32, #tpu.memory_space<vmem>>, vector<64x1xf32>
    tpu.vector_store %arg8[%c0_17, %c0_18], %27 {strides = array<i32>} : memref<64x1xf32, #tpu.memory_space<vmem>>, vector<64x1xf32>,
    return
  }
  func.func @transform_0(%arg0: i32) -> (i32, i32) {
    %c0_i32 = arith.constant 0 : i32
    %c0_i32_0 = arith.constant 0 : i32
    return %arg0, %c0_i32 : i32, i32
  }
  func.func @transform_1(%arg0: i32) -> (i32, i32) {
    %c0_i32 = arith.constant 0 : i32
    %c0_i32_0 = arith.constant 0 : i32
    %c0_i32_1 = arith.constant 0 : i32
    return %c0_i32, %c0_i32_0 : i32, i32
  }
  func.func @transform_2(%arg0: i32) -> (i32, i32) {
    %c0_i32 = arith.constant 0 : i32
    %c0_i32_0 = arith.constant 0 : i32
    %c0_i32_1 = arith.constant 0 : i32
    return %c0_i32, %c0_i32_0 : i32, i32
  }
  func.func @transform_3(%arg0: i32) -> (i32, i32) {
    %c0_i32 = arith.constant 0 : i32
    %c0_i32_0 = arith.constant 0 : i32
    %c0_i32_1 = arith.constant 0 : i32
    return %c0_i32, %c0_i32_0 : i32, i32
  }
  func.func @transform_4(%arg0: i32) -> (i32, i32) {
    %c0_i32 = arith.constant 0 : i32
    %c0_i32_0 = arith.constant 0 : i32
    %c0_i32_1 = arith.constant 0 : i32
    return %c0_i32, %c0_i32_0 : i32, i32
  }
  func.func @transform_5(%arg0: i32) -> (i32, i32) {
    %c0_i32 = arith.constant 0 : i32
    %c0_i32_0 = arith.constant 0 : i32
    %c0_i32_1 = arith.constant 0 : i32
    return %c0_i32, %c0_i32_0 : i32, i32
  }
  func.func @transform_6(%arg0: i32) -> i32 {
    %c0_i32 = arith.constant 0 : i32
    %c0_i32_0 = arith.constant 0 : i32
    return %c0_i32 : i32
  }
  func.func @transform_7(%arg0: i32) -> (i32, i32) {
    %c0_i32 = arith.constant 0 : i32
    %c0_i32_0 = arith.constant 0 : i32
    return %arg0, %c0_i32 : i32, i32
  }
}

</mosaic_0001>

<bundles_post_ra>
// kernel: tpu_custom_call.1
= control target key start
LH: loop header
LB: loop body
LE: loop exit
PB: predicated region body
PF: predicated region fallthrough
CT: control target
= control target key end

     0   :  { %s863_s26 = smov 0   ;;  %s994_s0 = inlined_call_operand.vmem [shape: f32[128,32], index: 0, kind: input, shape index: {}]   ;;  %s995_s1 = inlined_call_operand.vmem [shape: f32[32,64], index: 1, kind: input, shape index: {}]   ;;  %s996_s2 = inlined_call_operand.vmem [shape: f32[1,64], index: 2, kind: input, shape index: {}]   ;;  %s997_s3 = inlined_call_operand.vmem [shape: f32[64,32], index: 3, kind: input, shape index: {}]   ;;  %s998_s4 = inlined_call_operand.vmem [shape: f32[1,32], index: 4, kind: input, shape index: {}]   ;;  %s999_s5 = inlined_call_operand.vmem [shape: f32[1,32], index: 5, kind: input, shape index: {}]   ;;  %s1000_s6 = inlined_call_operand.<no memory space> [shape: f32[1], index: 6, kind: input, shape index: {}]   ;;  %s1001_s7 = inlined_call_operand.vmem [shape: f32[128,1], index: 7, kind: output, shape index: {}]  }
   0x1   :  { %12 = sst [smem:[#allocation2]] %s1000_s6 }
   0x2 LB: > { %s722_s27 = sadd.s32 4294967295, %s818_s26   ;;  %p726_p0 = scmp.ge.s32.totalorder %s818_s26, 1  ;;  %s818_s26 = sphi %s863_s26, %s18_s26  }
   0x3   : > { %p239_p1 = scmp.lt.s32.totalorder %s818_s26, 3 }
   0x5   : > { %p240_p2 = pnand %p726_p0, %p239_p1 }
   0x6   : > { %s727_s8 = sshll.u32 (!%p240_p2), %s722_s27, 3  ;;  %s495_s18 = sld [smem:[#allocation2]] (!%p240_p2) }
   0x7   : > { %243 = sbr.rel (%p240_p2) target bundleno = 492 (0x1ec), region = 48  ;;  %p272_p3 = scmp.lt.s32.totalorder (!%p240_p2), %s727_s8, 15 }
   0xc   : > { %v294_v0 = vld [vmem:[%s995_s1 + $0x18] sm:$0xff]  ;;  %v293_v1 = vld [vmem:[%s995_s1 + $0x10] sm:$0xff]  ;;  %v292_v2 = vld [vmem:[%s995_s1 + $0x8] sm:$0xff]  ;;  %s1003_s8 = smov (!%p272_p3, %s727_s8), 15  ;;  %vm299_vm0 = vcmask 261120   ;;  %vm385_vm1 = vcmask 523264  }
   0xd   : > { %336 = vmatpush.msra.mxu0 %v294_v0  ;;  %757 = vmatpush.msra.mxu3 %v294_v0  ;;  %v291_v3 = vld [vmem:[%s995_s1] sm:$0xff]  ;;  %s728_s13 = sshll.u32 %s1003_s8, 3  ;;  %v380_v6 = vld [vmem:[%s997_s3 + $0x38] sm:$0xff]  ;;  %v379_v7 = vld [vmem:[%s997_s3 + $0x30] sm:$0xff]  ;;  %vm657_vm4 = vcmask 7168  }
   0xe   : > { %s891_s16 = scalar_lea.vmem %s994_s0, %s728_s13  ;;  %418 = vmatpush.msra.mxu1 %v380_v6  ;;  %761 = vmatpush.msra.mxu2 %v380_v6  ;;  %v378_v8 = vld [vmem:[%s997_s3 + $0x28] sm:$0xff]  ;;  %v377_v10 = vld [vmem:[%s997_s3 + $0x20] sm:$0xff]  ;;  %v376_v12 = vld [vmem:[%s997_s3 + $0x18] sm:$0xff]  ;;  %s969_s21 = scalar_lea.vmem %s1001_s7, %s728_s13 }
   0xf   : > { %337 = vmatpush.msra.mxu0 %v293_v1  ;;  %758 = vmatpush.msra.mxu3 %v293_v1  ;;  %v283_v4 = vld [vmem:[%s891_s16] sm:$0xff]  ;;  %v288_v5 = vld [vmem:[%s891_s16 + $0x28] sm:$0xff]  ;;  %v289_v11 = vld [vmem:[%s891_s16 + $0x30] sm:$0xff] }
  0x10   : > { %419 = vmatpush.msra.mxu1 %v379_v7  ;;  %762 = vmatpush.msra.mxu2 %v379_v7  ;;  %v284_v9 = vld [vmem:[%s891_s16 + $0x8] sm:$0xff]  ;;  %v285_v13 = vld [vmem:[%s891_s16 + $0x10] sm:$0xff]  ;;  %v290_v14 = vld [vmem:[%s891_s16 + $0x38] sm:$0xff] }
  0x11   : > { %338 = vmatpush.msra.mxu0 %v292_v2  ;;  %759 = vmatpush.msra.mxu3 %v292_v2  ;;  %v286_v15 = vld [vmem:[%s891_s16 + $0x18] sm:$0xff]  ;;  %v287_v16 = vld [vmem:[%s891_s16 + $0x20] sm:$0xff]  ;;  %v375_v17 = vld [vmem:[%s997_s3 + $0x10] sm:$0xff] }
  0x12   : > { %420 = vmatpush.msra.mxu1 %v378_v8  ;;  %763 = vmatpush.msra.mxu2 %v378_v8  ;;  %v374_v18 = vld [vmem:[%s997_s3 + $0x8] sm:$0xff]  ;;  %v373_v19 = vld [vmem:[%s997_s3] sm:$0xff] }
  0x13   : > { %339 = vmatpush.msra.mxu0 %v291_v3  ;;  %760 = vmatpush.msra.mxu3 %v291_v3  ;;  %v777_v20 = vld [vmem:[%s996_s2] ss:$0 sm:$0xff] }
  0x14   : > { %731 = vmatmul.msk.f32.vlgmr.msra.gmra.mxu0 %vm299_vm0, %v283_v4  ;;  %736 = vmatmul.msk.f32.vlgmr.msra.gmra.mxu3 %vm299_vm0, %v288_v5  ;;  %v778_v45 = vld [vmem:[%s998_s4] ss:$0 sm:$0xff] }
  0x15   : > { %421 = vmatpush.msra.mxu1 %v377_v10  ;;  %764 = vmatpush.msra.mxu2 %v377_v10  ;;  %v779_v48 = vld [vmem:[%s999_s5] ss:$0 sm:$0xff] }
  0x17   : > { %422 = vmatpush.msra.mxu1 %v376_v12  ;;  %765 = vmatpush.msra.mxu2 %v376_v12 }
  0x19   : > { %423 = vmatpush.msra.mxu1 %v375_v17  ;;  %766 = vmatpush.msra.mxu2 %v375_v17 }
  0x1b   : > { %424 = vmatpush.msra.mxu1 %v374_v18  ;;  %767 = vmatpush.msra.mxu2 %v374_v18 }
  0x1c   : > { %732 = vmatmul.msk.f32.gmra.mxu0 %vm299_vm0, %v284_v9  ;;  %737 = vmatmul.msk.f32.gmra.mxu3 %vm299_vm0, %v289_v11 }
  0x1d   : > { %425 = vmatpush.msra.mxu1 %v373_v19  ;;  %768 = vmatpush.msra.mxu2 %v373_v19 }
  0x24   : > { %733 = vmatmul.msk.f32.gmra.mxu0 %vm299_vm0, %v285_v13  ;;  %738 = vmatmul.msk.f32.gmra.mxu3 %vm299_vm0, %v290_v14 }
  0x2c   : > { %734 = vmatmul.msk.f32.gmra.mxu0 %vm299_vm0, %v286_v15 }
  0x34   : > { %735 = vmatmul.msk.f32.gmra.mxu0 %vm299_vm0, %v287_v16 }
  0x91   : > { %v341_v21 = vpop.f32.mrf.mxu0 }
  0x92   : > { %v342_v22 = vadd.f32 %v777_v20, %v341_v21 }
  0x94   : > { %v365_v23 = vmax.f32 %v342_v22, 0.0 }
  0x96   : > { %739 = vmatmul.msk.f32.vlgmr.msra.gmra.mxu1 %vm385_vm1, %v365_v23  ;;  %v958_v23 = vstv %s495_s18 }
  0x97   : > { %v356_v33 = vpop.f32.mrf.mxu3 }
  0x98   : > { %v357_v37 = vadd.f32 %v777_v20, %v356_v33 }
  0x99   : > { %v344_v24 = vpop.f32.mrf.mxu0 }
  0x9a   : > { %v345_v25 = vadd.f32 %v777_v20, %v344_v24  ;;  %v370_v39 = vmax.f32 %v357_v37, 0.0 }
  0x9c   : > { %v366_v26 = vmax.f32 %v345_v25, 0.0 }
  0x9e   : > { %740 = vmatmul.msk.f32.gmra.mxu1 %vm385_vm1, %v366_v26 }
  0x9f   : > { %v359_v38 = vpop.f32.mrf.mxu3 }
  0xa0   : > { %v360_v40 = vadd.f32 %v777_v20, %v359_v38 }
  0xa1   : > { %v347_v27 = vpop.f32.mrf.mxu0 }
  0xa2   : > { %v348_v28 = vadd.f32 %v777_v20, %v347_v27  ;;  %v371_v41 = vmax.f32 %v360_v40, 0.0 }
  0xa4   : > { %v367_v29 = vmax.f32 %v348_v28, 0.0 }
  0xa6   : > { %741 = vmatmul.msk.f32.gmra.mxu1 %vm385_vm1, %v367_v29 }
  0xa7   : > { %v362_v42 = vpop.f32.mrf.mxu3 }
  0xa8   : > { %v363_v43 = vadd.f32 %v777_v20, %v362_v42 }
  0xa9   : > { %v350_v30 = vpop.f32.mrf.mxu0 }
  0xaa   : > { %v351_v31 = vadd.f32 %v777_v20, %v350_v30  ;;  %v372_v44 = vmax.f32 %v363_v43, 0.0 }
  0xac   : > { %v368_v32 = vmax.f32 %v351_v31, 0.0 }
  0xae   : > { %742 = vmatmul.msk.f32.gmra.mxu1 %vm385_vm1, %v368_v32 }
  0xb1   : > { %v353_v34 = vpop.f32.mrf.mxu0 }
  0xb2   : > { %v354_v35 = vadd.f32 %v777_v20, %v353_v34 }
  0xb4   : > { %v369_v36 = vmax.f32 %v354_v35, 0.0 }
  0xb6   : > { %743 = vmatmul.msk.f32.vlgmr.msra.gmra.mxu2 %vm385_vm1, %v369_v36 }
  0xbe   : > { %744 = vmatmul.msk.f32.gmra.mxu2 %vm385_vm1, %v370_v39 }
  0xc6   : > { %745 = vmatmul.msk.f32.gmra.mxu2 %vm385_vm1, %v371_v41 }
  0xce   : > { %746 = vmatmul.msk.f32.gmra.mxu2 %vm385_vm1, %v372_v44 }
 0x113   : > { %v427_v46 = vpop.f32.mrf.mxu1 }
 0x114   : > { %v428_v47 = vadd.f32 %v778_v45, %v427_v46 }
 0x116   : > { %v451_v49 = vmax.f32 %v428_v47, 0.0 }
 0x118   : > { %v463_v50 = vmul.f32 %v779_v48, %v451_v49 }
 0x11a   : > { %v471_v51 = vsel %vm299_vm0, %v463_v50, 0.0 }
 0x11b   : > { %v430_v52 = vpop.f32.mrf.mxu1  ;;  %472 = vadd.xlane.f32.xlu0 %v471_v51 }
 0x11c   : > { %v431_v53 = vadd.f32 %v778_v45, %v430_v52 }
 0x11e   : > { %v452_v54 = vmax.f32 %v431_v53, 0.0 }
 0x120   : > { %v464_v55 = vmul.f32 %v779_v48, %v452_v54 }
 0x122   : > { %v474_v56 = vsel %vm299_vm0, %v464_v55, 0.0 }
 0x123   : > { %v433_v57 = vpop.f32.mrf.mxu1  ;;  %475 = vadd.xlane.f32.xlu0 %v474_v56 }
 0x124   : > { %v434_v58 = vadd.f32 %v778_v45, %v433_v57 }
 0x126   : > { %v453_v59 = vmax.f32 %v434_v58, 0.0 }
 0x128   : > { %v465_v60 = vmul.f32 %v779_v48, %v453_v59 }
 0x12a   : > { %v477_v61 = vsel %vm299_vm0, %v465_v60, 0.0 }
 0x12b   : > { %v436_v62 = vpop.f32.mrf.mxu1  ;;  %478 = vadd.xlane.f32.xlu1 %v477_v61 }
 0x12c   : > { %v437_v63 = vadd.f32 %v778_v45, %v436_v62 }
 0x12e   : > { %v454_v0 = vmax.f32 %v437_v63, 0.0 }
 0x130   : > { %v466_v1 = vmul.f32 %v779_v48, %v454_v0 }
 0x132   : > { %v480_v2 = vsel %vm299_vm0, %v466_v1, 0.0 }
 0x133   : > { %481 = vadd.xlane.f32.xlu1 %v480_v2 }
 0x139   : > { %v439_v3 = vpop.f32.mrf.mxu2 }
 0x13a   : > { %v440_v4 = vadd.f32 %v778_v45, %v439_v3 }
 0x13c   : > { %v455_v5 = vmax.f32 %v440_v4, 0.0 }
 0x13e   : > { %v467_v6 = vmul.f32 %v779_v48, %v455_v5 }
 0x140   : > { %v483_v7 = vsel %vm299_vm0, %v467_v6, 0.0 }
 0x141   : > { %v442_v8 = vpop.f32.mrf.mxu2  ;;  %484 = vadd.xlane.f32.xlu2 %v483_v7 }
 0x142   : > { %v443_v9 = vadd.f32 %v778_v45, %v442_v8 }
 0x144   : > { %v456_v10 = vmax.f32 %v443_v9, 0.0 }
 0x146   : > { %v468_v11 = vmul.f32 %v779_v48, %v456_v10 }
 0x148   : > { %v486_v12 = vsel %vm299_vm0, %v468_v11, 0.0 }
 0x149   : > { %v445_v13 = vpop.f32.mrf.mxu2  ;;  %487 = vadd.xlane.f32.xlu2 %v486_v12 }
 0x14a   : > { %v446_v14 = vadd.f32 %v778_v45, %v445_v13 }
 0x14c   : > { %v457_v15 = vmax.f32 %v446_v14, 0.0 }
 0x14e   : > { %v469_v16 = vmul.f32 %v779_v48, %v457_v15 }
 0x150   : > { %v489_v17 = vsel %vm299_vm0, %v469_v16, 0.0 }
 0x151   : > { %v448_v18 = vpop.f32.mrf.mxu2  ;;  %490 = vadd.xlane.f32.xlu0 %v489_v17 }
 0x152   : > { %v449_v19 = vadd.f32 %v778_v45, %v448_v18 }
 0x154   : > { %v458_v20 = vmax.f32 %v449_v19, 0.0 }
 0x156   : > { %v470_v21 = vmul.f32 %v779_v48, %v458_v20 }
 0x158   : > { %v492_v22 = vsel %vm299_vm0, %v470_v21, 0.0 }
 0x159   : > { %493 = vadd.xlane.f32.xlu1 %v492_v22 }
 0x18e   : > { %v473_v24 = vpop.xlane.xlu0 %472 }
 0x18f   : > { %v497_v25 = vadd.f32 %v958_v23, %v473_v24 }
 0x191   : > { %v747_v26 = vmul.f32 -1.442695, %v497_v25 }
 0x193   : > { %780 = vpow2.f32 %v747_v26 }
 0x196   : > { %v476_v27 = vpop.xlane.xlu0 %475 }
 0x197   : > { %v498_v28 = vadd.f32 %v958_v23, %v476_v27 }
 0x199   : > { %v781_v29 = vpop.eup %780  ;;  %v748_v30 = vmul.f32 -1.442695, %v498_v28 }
 0x19a   : > { %v529_v31 = vadd.f32 1.0, %v781_v29 }
 0x19b   : > { %782 = vpow2.f32 %v748_v30 }
 0x19c   : > { %784 = vrcp.f32 %v529_v31  ;;  %v548_v40 = vand.u32 2147483648, %v529_v31  ;;  %v546_v43 = vand.u32 2147483647, %v529_v31  ;;  %vm542_vm3 = vweird.f32 %v529_v31 }
 0x19e   : > { %v479_v32 = vpop.xlane.xlu1 %478  ;;  %v549_v49 = vor.u32 1.1754944e-38, %v548_v40  ;;  %vm547_vm6 = vcmp.eq.f32.partialorder %v546_v43, 8.507059e+37 }
 0x19f   : > { %v499_v33 = vadd.f32 %v958_v23, %v479_v32 }
 0x1a1   : > { %v783_v34 = vpop.eup %782  ;;  %v749_v35 = vmul.f32 -1.442695, %v499_v33 }
 0x1a2   : > { %v785_v36 = vpop.eup %784  ;;  %v530_v37 = vadd.f32 1.0, %v783_v34 }
 0x1a3   : > { %v538_v38 = vmul.f32 %v785_v36, %v529_v31  ;;  %786 = vpow2.f32 %v749_v35  ;;  %vm543_vm2 = vweird.f32 %v785_v36 }
 0x1a4   : > { %788 = vrcp.f32 %v530_v37  ;;  %vm544_vm5 = vmor %vm542_vm3, %vm543_vm2  ;;  %v563_v55 = vand.u32 2147483648, %v530_v37  ;;  %v561_v57 = vand.u32 2147483647, %v530_v37  ;;  %vm557_vm8 = vweird.f32 %v530_v37 }
 0x1a5   : > { %v539_v39 = vsub.f32 1.0, %v538_v38 }
 0x1a6   : > { %v482_v41 = vpop.xlane.xlu1 %481  ;;  %v564_v61 = vor.u32 1.1754944e-38, %v563_v55  ;;  %vm562_vm10 = vcmp.eq.f32.partialorder %v561_v57, 8.507059e+37 }
 0x1a7   : > { %v540_v42 = vmul.f32 %v785_v36, %v539_v39  ;;  %v500_v44 = vadd.f32 %v958_v23, %v482_v41 }
 0x1a9   : > { %v787_v45 = vpop.eup %786  ;;  %v541_v46 = vadd.f32 %v785_v36, %v540_v42  ;;  %v750_v47 = vmul.f32 -1.442695, %v500_v44 }
 0x1aa   : > { %v789_v48 = vpop.eup %788  ;;  %v531_v50 = vadd.f32 1.0, %v787_v45 }
 0x1ab   : > { %v545_v51 = vsel %vm544_vm5, %v785_v36, %v541_v46  ;;  %v553_v52 = vmul.f32 %v789_v48, %v530_v37  ;;  %790 = vpow2.f32 %v750_v47  ;;  %vm558_vm7 = vweird.f32 %v789_v48 }
 0x1ac   : > { %v550_v53 = vsel %vm547_vm6, %v549_v49, %v545_v51  ;;  %792 = vrcp.f32 %v531_v50  ;;  %vm559_vm9 = vmor %vm557_vm8, %vm558_vm7  ;;  %v578_v5 = vand.u32 2147483648, %v531_v50  ;;  %v576_v7 = vand.u32 2147483647, %v531_v50 }
 0x1ad   : > { %658 = vst.msk [vmem:[%s969_s21] sm:$0xff] %vm657_vm4, %v550_v53  ;;  %v554_v54 = vsub.f32 1.0, %v553_v52  ;;  %vm572_vm12 = vweird.f32 %v531_v50 }
 0x1ae   : > { %v579_v11 = vor.u32 1.1754944e-38, %v578_v5  ;;  %vm577_vm14 = vcmp.eq.f32.partialorder %v576_v7, 8.507059e+37 }
 0x1af   : > { %v555_v56 = vmul.f32 %v789_v48, %v554_v54 }
 0x1b1   : > { %v791_v58 = vpop.eup %790  ;;  %v556_v59 = vadd.f32 %v789_v48, %v555_v56 }
 0x1b2   : > { %v793_v60 = vpop.eup %792  ;;  %v532_v62 = vadd.f32 1.0, %v791_v58 }
 0x1b3   : > { %v560_v63 = vsel %vm559_vm9, %v789_v48, %v556_v59  ;;  %v568_v0 = vmul.f32 %v793_v60, %v531_v50  ;;  %vm573_vm11 = vweird.f32 %v793_v60 }
 0x1b4   : > { %v565_v1 = vsel %vm562_vm10, %v564_v61, %v560_v63  ;;  %794 = vrcp.f32 %v532_v62  ;;  %v485_v2 = vpop.xlane.xlu2 %484  ;;  %vm574_vm13 = vmor %vm572_vm12, %vm573_vm11  ;;  %v593_v18 = vand.u32 2147483648, %v532_v62  ;;  %v591_v21 = vand.u32 2147483647, %v532_v62 }
 0x1b5   : > { %659 = vst.msk [vmem:[%s969_s21 + $0x8] sm:$0xff] %vm657_vm4, %v565_v1  ;;  %v569_v3 = vsub.f32 1.0, %v568_v0  ;;  %v501_v4 = vadd.f32 %v958_v23, %v485_v2  ;;  %vm587_vm0 = vweird.f32 %v532_v62 }
 0x1b6   : > { %v594_v26 = vor.u32 1.1754944e-38, %v593_v18  ;;  %vm592_vm2 = vcmp.eq.f32.partialorder %v591_v21, 8.507059e+37 }
 0x1b7   : > { %v570_v6 = vmul.f32 %v793_v60, %v569_v3  ;;  %v751_v8 = vmul.f32 -1.442695, %v501_v4 }
 0x1b9   : > { %v571_v9 = vadd.f32 %v793_v60, %v570_v6  ;;  %796 = vpow2.f32 %v751_v8 }
 0x1ba   : > { %v795_v10 = vpop.eup %794 }
 0x1bb   : > { %v575_v12 = vsel %vm574_vm13, %v793_v60, %v571_v9  ;;  %v583_v13 = vmul.f32 %v795_v10, %v532_v62  ;;  %vm588_vm15 = vweird.f32 %v795_v10 }
 0x1bc   : > { %v580_v14 = vsel %vm577_vm14, %v579_v11, %v575_v12  ;;  %v488_v15 = vpop.xlane.xlu2 %487  ;;  %vm589_vm1 = vmor %vm587_vm0, %vm588_vm15 }
 0x1bd   : > { %660 = vst.msk [vmem:[%s969_s21 + $0x10] sm:$0xff] %vm657_vm4, %v580_v14  ;;  %v584_v16 = vsub.f32 1.0, %v583_v13  ;;  %v502_v17 = vadd.f32 %v958_v23, %v488_v15 }
 0x1bf   : > { %v797_v19 = vpop.eup %796  ;;  %v585_v20 = vmul.f32 %v795_v10, %v584_v16  ;;  %v752_v22 = vmul.f32 -1.442695, %v502_v17 }
 0x1c0   : > { %v533_v24 = vadd.f32 1.0, %v797_v19 }
 0x1c1   : > { %v586_v25 = vadd.f32 %v795_v10, %v585_v20  ;;  %798 = vpow2.f32 %v752_v22 }
 0x1c2   : > { %800 = vrcp.f32 %v533_v24  ;;  %v608_v37 = vand.u32 2147483648, %v533_v24  ;;  %v606_v40 = vand.u32 2147483647, %v533_v24  ;;  %vm602_vm5 = vweird.f32 %v533_v24 }
 0x1c3   : > { %v590_v27 = vsel %vm589_vm1, %v795_v10, %v586_v25 }
 0x1c4   : > { %v595_v28 = vsel %vm592_vm2, %v594_v26, %v590_v27  ;;  %v491_v29 = vpop.xlane.xlu0 %490  ;;  %v609_v46 = vor.u32 1.1754944e-38, %v608_v37  ;;  %vm607_vm7 = vcmp.eq.f32.partialorder %v606_v40, 8.507059e+37 }
 0x1c5   : > { %661 = vst.msk [vmem:[%s969_s21 + $0x18] sm:$0xff] %vm657_vm4, %v595_v28  ;;  %v503_v30 = vadd.f32 %v958_v23, %v491_v29 }
 0x1c7   : > { %v799_v31 = vpop.eup %798  ;;  %v753_v32 = vmul.f32 -1.442695, %v503_v30 }
 0x1c8   : > { %v801_v33 = vpop.eup %800  ;;  %v534_v34 = vadd.f32 1.0, %v799_v31 }
 0x1c9   : > { %v598_v35 = vmul.f32 %v801_v33, %v533_v24  ;;  %802 = vpow2.f32 %v753_v32  ;;  %vm603_vm3 = vweird.f32 %v801_v33 }
 0x1ca   : > { %804 = vrcp.f32 %v534_v34  ;;  %vm604_vm6 = vmor %vm602_vm5, %vm603_vm3  ;;  %v623_v52 = vand.u32 2147483648, %v534_v34  ;;  %v621_v53 = vand.u32 2147483647, %v534_v34  ;;  %vm617_vm9 = vweird.f32 %v534_v34 }
 0x1cb   : > { %v599_v36 = vsub.f32 1.0, %v598_v35 }
 0x1cc   : > { %v494_v38 = vpop.xlane.xlu1 %493  ;;  %v624_v57 = vor.u32 1.1754944e-38, %v623_v52  ;;  %vm622_vm11 = vcmp.eq.f32.partialorder %v621_v53, 8.507059e+37 }
 0x1cd   : > { %v600_v39 = vmul.f32 %v801_v33, %v599_v36  ;;  %v504_v41 = vadd.f32 %v958_v23, %v494_v38 }
 0x1cf   : > { %v803_v42 = vpop.eup %802  ;;  %v601_v43 = vadd.f32 %v801_v33, %v600_v39  ;;  %v754_v44 = vmul.f32 -1.442695, %v504_v41 }
 0x1d0   : > { %v805_v45 = vpop.eup %804  ;;  %v535_v47 = vadd.f32 1.0, %v803_v42 }
 0x1d1   : > { %v605_v48 = vsel %vm604_vm6, %v801_v33, %v601_v43  ;;  %v613_v49 = vmul.f32 %v805_v45, %v534_v34  ;;  %806 = vpow2.f32 %v754_v44  ;;  %vm618_vm8 = vweird.f32 %v805_v45 }
 0x1d2   : > { %v610_v50 = vsel %vm607_vm7, %v609_v46, %v605_v48  ;;  %808 = vrcp.f32 %v535_v47  ;;  %vm619_vm10 = vmor %vm617_vm9, %vm618_vm8  ;;  %v638_v63 = vand.u32 2147483648, %v535_v47  ;;  %v636_v1 = vand.u32 2147483647, %v535_v47 }
 0x1d3   : > { %662 = vst.msk [vmem:[%s969_s21 + $0x20] sm:$0xff] %vm657_vm4, %v610_v50  ;;  %v614_v51 = vsub.f32 1.0, %v613_v49  ;;  %vm632_vm13 = vweird.f32 %v535_v47 }
 0x1d4   : > { %v639_v4 = vor.u32 1.1754944e-38, %v638_v63  ;;  %vm637_vm15 = vcmp.eq.f32.partialorder %v636_v1, 8.507059e+37 }
 0x1d5   : > { %v615_v23 = vmul.f32 %v805_v45, %v614_v51 }
 0x1d7   : > { %v807_v54 = vpop.eup %806  ;;  %v616_v55 = vadd.f32 %v805_v45, %v615_v23 }
 0x1d8   : > { %v809_v56 = vpop.eup %808  ;;  %v536_v58 = vadd.f32 1.0, %v807_v54 }
 0x1d9   : > { %v620_v59 = vsel %vm619_vm10, %v805_v45, %v616_v55  ;;  %v628_v60 = vmul.f32 %v809_v56, %v535_v47  ;;  %vm633_vm12 = vweird.f32 %v809_v56 }
 0x1da   : > { %v625_v61 = vsel %vm622_vm11, %v624_v57, %v620_v59  ;;  %810 = vrcp.f32 %v536_v58  ;;  %vm634_vm14 = vmor %vm632_vm13, %vm633_vm12  ;;  %v653_v9 = vand.u32 2147483648, %v536_v58  ;;  %v651_v11 = vand.u32 2147483647, %v536_v58 }
 0x1db   : > { %663 = vst.msk [vmem:[%s969_s21 + $0x28] sm:$0xff] %vm657_vm4, %v625_v61  ;;  %v629_v62 = vsub.f32 1.0, %v628_v60  ;;  %vm647_vm1 = vweird.f32 %v536_v58 }
 0x1dc   : > { %v654_v13 = vor.u32 1.1754944e-38, %v653_v9  ;;  %vm652_vm3 = vcmp.eq.f32.partialorder %v651_v11, 8.507059e+37 }
 0x1dd   : > { %v630_v0 = vmul.f32 %v809_v56, %v629_v62 }
 0x1df   : > { %v631_v2 = vadd.f32 %v809_v56, %v630_v0 }
 0x1e0   : > { %v811_v3 = vpop.eup %810 }
 0x1e1   : > { %v635_v5 = vsel %vm634_vm14, %v809_v56, %v631_v2  ;;  %v643_v6 = vmul.f32 %v811_v3, %v536_v58  ;;  %vm648_vm0 = vweird.f32 %v811_v3 }
 0x1e2   : > { %v640_v7 = vsel %vm637_vm15, %v639_v4, %v635_v5  ;;  %vm649_vm2 = vmor %vm647_vm1, %vm648_vm0 }
 0x1e3   : > { %664 = vst.msk [vmem:[%s969_s21 + $0x30] sm:$0xff] %vm657_vm4, %v640_v7  ;;  %v644_v8 = vsub.f32 1.0, %v643_v6 }
 0x1e5   : > { %v645_v10 = vmul.f32 %v811_v3, %v644_v8 }
 0x1e7   : > { %v646_v12 = vadd.f32 %v811_v3, %v645_v10 }
 0x1e9   : > { %v650_v14 = vsel %vm649_vm2, %v811_v3, %v646_v12 }
 0x1ea   : > { %v655_v15 = vsel %vm652_vm3, %v654_v13, %v650_v14 }
 0x1eb   : > { %665 = vst.msk [vmem:[%s969_s21 + $0x38] sm:$0xff] %vm657_vm4, %v655_v15 }
 0x1ec PF: > { %s18_s26 = sadd.s32 1, %s818_s26  }
 0x1ed   : > { %p15_p4 = scmp.ge.s32.totalorder %s18_s26, 4  }
 0x1ef   :  { %17 = sbr.rel (!%p15_p4) target bundleno = 2 (0x2), region = 78 }

</bundles_post_ra>
